<compile_context>
chip_gen: v7x
topology: tpu7x:2x2x1
jax: 0.10.0
libtpu: 0.0.40
codegen_flags: <defaults>
</compile_context>

<pallas_src>
import jax
import jax.numpy as jnp
from jax.experimental import pallas as pl
from jax.experimental.pallas import tpu as pltpu


TILE_B = 128  # batch tile: multiple of 8 (f32 sublanes), lane-width friendly


def _gan_kernel(x_ref,
                gw1_ref, gb1_ref, gw2_ref, gb2_ref,
                dw1_ref, db1_ref, dw2_ref, db2_ref,
                gen_ref, prob_ref):
    """One batch tile of the fused Generator -> Discriminator forward."""
    x = x_ref[...]                                              # (TILE_B, latent) f32

    # ---- Generator: Linear + ReLU ----
    h = jnp.dot(x.astype(gw1_ref.dtype), gw1_ref[...],
                preferred_element_type=jnp.float32) + gb1_ref[...]
    h = jnp.maximum(h, 0.0)

    # ---- Generator: Linear + Tanh ----
    g = jnp.dot(h.astype(gw2_ref.dtype), gw2_ref[...],
                preferred_element_type=jnp.float32) + gb2_ref[...]
    gen = jnp.tanh(g)                                           # (TILE_B, data) f32
    gen_ref[...] = gen.astype(gen_ref.dtype)

    # ---- Discriminator: Linear + LeakyReLU(0.2) ----
    d = jnp.dot(gen.astype(dw1_ref.dtype), dw1_ref[...],
                preferred_element_type=jnp.float32) + db1_ref[...]
    d = jnp.where(d > 0.0, d, 0.2 * d)

    # ---- Discriminator: Linear(out=1) + Sigmoid ----
    # Width-1 output: VPU multiply + XLU lane reduction instead of an MXU pass.
    logit = jnp.sum(d * dw2_ref[...], axis=-1, keepdims=True) + db2_ref[0, 0]
    # Numerically stable sigmoid on the EUP: sigmoid(x) = 0.5*(tanh(x/2)+1).
    prob = 0.5 * (jnp.tanh(0.5 * logit) + 1.0)

    # Lane-dense store: broadcast across all 128 lanes; wrapper slices column 0.
    prob_ref[...] = jnp.broadcast_to(prob, prob_ref.shape).astype(prob_ref.dtype)


def gan_forward(x, params, *, tile_b=TILE_B):
    """Fused GAN forward. x: (B, latent). Returns (gen_sample (B, data), prob (B, 1))."""
    B, latent = x.shape
    g_hidden = params["gw1"].shape[1]
    data = params["gw2"].shape[1]
    d_hidden = params["dw1"].shape[1]

    # Pad batch up to a multiple of the tile; padded rows are sliced off at the end.
    n_tiles = pl.cdiv(B, tile_b)
    b_pad = n_tiles * tile_b
    if b_pad != B:
        x = jnp.pad(x, ((0, b_pad - B), (0, 0)))

    # bf16 MXU operands (weights); biases and accumulation stay f32.
    gw1 = params["gw1"].astype(jnp.bfloat16)
    gw2 = params["gw2"].astype(jnp.bfloat16)
    dw1 = params["dw1"].astype(jnp.bfloat16)
    dw2_row = params["dw2"].reshape(1, d_hidden).astype(jnp.float32)   # (1, d_hidden)
    db2 = params["db2"].reshape(1, 1).astype(jnp.float32)              # scalar -> SMEM

    resident = lambda i: (0, 0)   # weights/biases: same block every step -> VMEM-resident

    gen_pad, prob_pad = pl.pallas_call(
        _gan_kernel,
        grid=(n_tiles,),
        in_specs=[
            pl.BlockSpec((tile_b, latent), lambda i: (i, 0)),        # x tile
            pl.BlockSpec((latent, g_hidden), resident),              # gw1 (bf16)
            pl.BlockSpec((1, g_hidden), resident),                   # gb1
            pl.BlockSpec((g_hidden, data), resident),                # gw2 (bf16)
            pl.BlockSpec((1, data), resident),                       # gb2
            pl.BlockSpec((data, d_hidden), resident),                # dw1 (bf16)
            pl.BlockSpec((1, d_hidden), resident),                   # db1
            pl.BlockSpec((1, d_hidden), resident),                   # dw2 row (f32)
            pl.BlockSpec(memory_space=pltpu.MemorySpace.SMEM),       # db2 scalar
        ],
        out_specs=(
            pl.BlockSpec((tile_b, data), lambda i: (i, 0)),          # gen
            pl.BlockSpec((tile_b, 128), lambda i: (i, 0)),           # prob (lane-dense)
        ),
        out_shape=(
            jax.ShapeDtypeStruct((b_pad, data), jnp.float32),
            jax.ShapeDtypeStruct((b_pad, 128), jnp.float32),
        ),
        compiler_params=pltpu.CompilerParams(
            dimension_semantics=("parallel",)),   # batch tiles shard across TCs (v7x)
    )(x, gw1, params["gb1"], gw2, params["gb2"],
      dw1, params["db1"], dw2_row, db2)

    return gen_pad[:B], prob_pad[:B, :1]


def init_params(key, latent_size, g_hidden, data_size, d_hidden):
    """Deterministic synthetic parameter init (PyTorch Linear-style uniform)."""
    ks = jax.random.split(key, 8)

    def lin(kw, kb, fan_in, fan_out):
        scale = 1.0 / jnp.sqrt(jnp.float32(fan_in))
        w = jax.random.uniform(kw, (fan_in, fan_out), jnp.float32, -scale, scale)
        b = jax.random.uniform(kb, (1, fan_out), jnp.float32, -scale, scale)
        return w, b

    gw1, gb1 = lin(ks[0], ks[1], latent_size, g_hidden)
    gw2, gb2 = lin(ks[2], ks[3], g_hidden, data_size)
    dw1, db1 = lin(ks[4], ks[5], data_size, d_hidden)
    dw2, db2 = lin(ks[6], ks[7], d_hidden, 1)
    return dict(gw1=gw1, gb1=gb1, gw2=gw2, gb2=gb2,
                dw1=dw1, db1=db1, dw2=dw2, db2=db2)


def reference_forward(x, p):
    """Plain-JAX f32 reference mirroring the PyTorch layer-by-layer loop."""
    h = jnp.maximum(x @ p["gw1"] + p["gb1"], 0.0)
    gen = jnp.tanh(h @ p["gw2"] + p["gb2"])
    d = gen @ p["dw1"] + p["db1"]
    d = jnp.where(d > 0.0, d, 0.2 * d)
    prob = jax.nn.sigmoid(d @ p["dw2"] + p["db2"])
    return gen, prob


if __name__ == "__main__":
    B, LATENT, G_HIDDEN, DATA, D_HIDDEN = 256, 8, 32, 64, 32

    key = jax.random.PRNGKey(0)
    k_x, k_p = jax.random.split(key)
    x = jax.random.normal(k_x, (B, LATENT), dtype=jnp.float32)   # latent samples
    params = init_params(k_p, LATENT, G_HIDDEN, DATA, D_HIDDEN)

    gen_sample, prob = jax.jit(gan_forward)(x, params)
    jax.block_until_ready((gen_sample, prob))

    gen_ref, prob_ref = reference_forward(x, params)
    assert gen_sample.shape == (B, DATA) and prob.shape == (B, 1)
    # bf16 matmul operands -> slightly looser tolerance than pure-f32.
    assert jnp.allclose(gen_sample, gen_ref, atol=5e-2), \
        float(jnp.max(jnp.abs(gen_sample - gen_ref)))
    assert jnp.allclose(prob, prob_ref, atol=5e-2), \
        float(jnp.max(jnp.abs(prob - prob_ref)))
    assert bool(jnp.all((prob >= 0.0) & (prob <= 1.0)))

    print("KERNEL_OK")
</pallas_src>

<mosaic_0001>
module attributes {stable_mosaic.version = 11 : i64} {
  func.func @_gan_kernel(%arg0: i32, %arg1: memref<128x8xf32, #tpu.memory_space<vmem>>, %arg2: memref<8x32xbf16, #tpu.memory_space<vmem>>, %arg3: memref<1x32xf32, #tpu.memory_space<vmem>>, %arg4: memref<32x64xbf16, #tpu.memory_space<vmem>>, %arg5: memref<1x64xf32, #tpu.memory_space<vmem>>, %arg6: memref<64x32xbf16, #tpu.memory_space<vmem>>, %arg7: memref<1x32xf32, #tpu.memory_space<vmem>>, %arg8: memref<1x32xf32, #tpu.memory_space<vmem>>, %arg9: memref<1x1xf32, #tpu.memory_space<smem>>, %arg10: memref<128x64xf32, #tpu.memory_space<vmem>>, %arg11: memref<128x128xf32, #tpu.memory_space<vmem>>) attributes {dimension_semantics = [#tpu.dimension_semantics<parallel>], iteration_bounds = array<i64: 2>, scalar_prefetch = 0 : i64, scratch_operands = 0 : i64, tpu.core_type = #tpu.core_type<tc>, window_params = [{transform_indices = @transform_0, window_bounds = array<i64: 128, 8>}, {pipeline_mode = #tpu.pipeline_mode<synchronous>, transform_indices = @transform_1, window_bounds = array<i64: 8, 32>}, {pipeline_mode = #tpu.pipeline_mode<synchronous>, transform_indices = @transform_2, window_bounds = array<i64: 1, 32>}, {pipeline_mode = #tpu.pipeline_mode<synchronous>, transform_indices = @transform_3, window_bounds = array<i64: 32, 64>}, {pipeline_mode = #tpu.pipeline_mode<synchronous>, transform_indices = @transform_4, window_bounds = array<i64: 1, 64>}, {pipeline_mode = #tpu.pipeline_mode<synchronous>, transform_indices = @transform_5, window_bounds = array<i64: 64, 32>}, {pipeline_mode = #tpu.pipeline_mode<synchronous>, transform_indices = @transform_6, window_bounds = array<i64: 1, 32>}, {pipeline_mode = #tpu.pipeline_mode<synchronous>, transform_indices = @transform_7, window_bounds = array<i64: 1, 32>}, {transform_indices = @transform_8, window_bounds = array<i64: 1, 1>}, {transform_indices = @transform_9, window_bounds = array<i64: 128, 64>}, {transform_indices = @transform_10, window_bounds = array<i64: 128, 128>}]} {
    %c0 = arith.constant 0 : index
    %c0_0 = arith.constant 0 : index
    %0 = vector.load %arg1[%c0, %c0_0] : memref<128x8xf32, #tpu.memory_space<vmem>>, vector<128x8xf32>
    %1 = arith.truncf %0 : vector<128x8xf32> to vector<128x8xbf16>
    %c0_1 = arith.constant 0 : index
    %c0_2 = arith.constant 0 : index
    %2 = vector.load %arg2[%c0_1, %c0_2] : memref<8x32xbf16, #tpu.memory_space<vmem>>, vector<8x32xbf16>
    %cst = arith.constant dense<0.000000e+00> : vector<128x32xf32>
    %3 = tpu.matmul %1, %2, %cst {dimension_numbers = #tpu.dot_dimension_numbers<[1], [0], [0], [1], [0, 0, 1, 1], [], []>} : vector<128x8xbf16>, vector<8x32xbf16>, vector<128x32xf32> -> vector<128x32xf32>
    %c0_3 = arith.constant 0 : index
    %c0_4 = arith.constant 0 : index
    %4 = vector.load %arg3[%c0_3, %c0_4] : memref<1x32xf32, #tpu.memory_space<vmem>>, vector<1x32xf32>
    %5 = vector.broadcast %4 : vector<1x32xf32> to vector<128x32xf32>
    %6 = arith.addf %3, %5 : vector<128x32xf32>
    %cst_5 = arith.constant 0.000000e+00 : f32
    %7 = vector.broadcast %cst_5 : f32 to vector<128x32xf32>
    %8 = arith.maximumf %6, %7 : vector<128x32xf32>
    %9 = arith.truncf %8 : vector<128x32xf32> to vector<128x32xbf16>
    %c0_6 = arith.constant 0 : index
    %c0_7 = arith.constant 0 : index
    %10 = vector.load %arg4[%c0_6, %c0_7] : memref<32x64xbf16, #tpu.memory_space<vmem>>, vector<32x64xbf16>
    %cst_8 = arith.constant dense<0.000000e+00> : vector<128x64xf32>
    %11 = tpu.matmul %9, %10, %cst_8 {dimension_numbers = #tpu.dot_dimension_numbers<[1], [0], [0], [1], [0, 0, 1, 1], [], []>} : vector<128x32xbf16>, vector<32x64xbf16>, vector<128x64xf32> -> vector<128x64xf32>
    %c0_9 = arith.constant 0 : index
    %c0_10 = arith.constant 0 : index
    %12 = vector.load %arg5[%c0_9, %c0_10] : memref<1x64xf32, #tpu.memory_space<vmem>>, vector<1x64xf32>
    %13 = vector.broadcast %12 : vector<1x64xf32> to vector<128x64xf32>
    %14 = arith.addf %11, %13 : vector<128x64xf32>
    %15 = math.tanh %14 : vector<128x64xf32>
    %c0_11 = arith.constant 0 : index
    %c0_12 = arith.constant 0 : index
    %16 = vector.load %arg10[%c0_11, %c0_12] : memref<128x64xf32, #tpu.memory_space<vmem>>, vector<128x64xf32>
    tpu.vector_store %arg10[%c0_11, %c0_12], %15 {strides = array<i32>} : memref<128x64xf32, #tpu.memory_space<vmem>>, vector<128x64xf32>,
    %17 = arith.truncf %15 : vector<128x64xf32> to vector<128x64xbf16>
    %c0_13 = arith.constant 0 : index
    %c0_14 = arith.constant 0 : index
    %18 = vector.load %arg6[%c0_13, %c0_14] : memref<64x32xbf16, #tpu.memory_space<vmem>>, vector<64x32xbf16>
    %cst_15 = arith.constant dense<0.000000e+00> : vector<128x32xf32>
    %19 = tpu.matmul %17, %18, %cst_15 {dimension_numbers = #tpu.dot_dimension_numbers<[1], [0], [0], [1], [0, 0, 1, 1], [], []>} : vector<128x64xbf16>, vector<64x32xbf16>, vector<128x32xf32> -> vector<128x32xf32>
    %c0_16 = arith.constant 0 : index
    %c0_17 = arith.constant 0 : index
    %20 = vector.load %arg7[%c0_16, %c0_17] : memref<1x32xf32, #tpu.memory_space<vmem>>, vector<1x32xf32>
    %21 = vector.broadcast %20 : vector<1x32xf32> to vector<128x32xf32>
    %22 = arith.addf %19, %21 : vector<128x32xf32>
    %cst_18 = arith.constant 0.000000e+00 : f32
    %23 = vector.broadcast %cst_18 : f32 to vector<128x32xf32>
    %24 = arith.cmpf ogt, %22, %23 : vector<128x32xf32>
    %cst_19 = arith.constant 2.000000e-01 : f32
    %25 = vector.broadcast %cst_19 : f32 to vector<128x32xf32>
    %26 = arith.mulf %25, %22 : vector<128x32xf32>
    %27 = arith.select %24, %22, %26 : vector<128x32xi1>, vector<128x32xf32>
    %c0_20 = arith.constant 0 : index
    %c0_21 = arith.constant 0 : index
    %28 = vector.load %arg8[%c0_20, %c0_21] : memref<1x32xf32, #tpu.memory_space<vmem>>, vector<1x32xf32>
    %29 = vector.broadcast %28 : vector<1x32xf32> to vector<128x32xf32>
    %30 = arith.mulf %27, %29 : vector<128x32xf32>
    %cst_22 = arith.constant dense<0.000000e+00> : vector<128xf32>
    %31 = vector.multi_reduction <add>, %30, %cst_22 [1] : vector<128x32xf32> to vector<128xf32>
    %32 = vector.shape_cast %31 : vector<128xf32> to vector<128x1xf32>
    %c0_23 = arith.constant 0 : index
    %c0_24 = arith.constant 0 : index
    %33 = memref.load %arg9[%c0_23, %c0_24] : memref<1x1xf32, #tpu.memory_space<smem>>
    %34 = vector.broadcast %33 : f32 to vector<128x1xf32>
    %35 = arith.addf %32, %34 : vector<128x1xf32>
    %cst_25 = arith.constant 5.000000e-01 : f32
    %36 = vector.broadcast %cst_25 : f32 to vector<128x1xf32>
    %37 = arith.mulf %36, %35 : vector<128x1xf32>
    %38 = math.tanh %37 : vector<128x1xf32>
    %cst_26 = arith.constant 1.000000e+00 : f32
    %39 = vector.broadcast %cst_26 : f32 to vector<128x1xf32>
    %40 = arith.addf %38, %39 : vector<128x1xf32>
    %cst_27 = arith.constant 5.000000e-01 : f32
    %41 = vector.broadcast %cst_27 : f32 to vector<128x1xf32>
    %42 = arith.mulf %41, %40 : vector<128x1xf32>
    %43 = vector.shape_cast %42 : vector<128x1xf32> to vector<128x1xf32>
    %44 = vector.broadcast %43 : vector<128x1xf32> to vector<128x128xf32>
    %c0_28 = arith.constant 0 : index
    %c0_29 = arith.constant 0 : index
    %45 = vector.load %arg11[%c0_28, %c0_29] : memref<128x128xf32, #tpu.memory_space<vmem>>, vector<128x128xf32>
    tpu.vector_store %arg11[%c0_28, %c0_29], %44 {strides = array<i32>} : memref<128x128xf32, #tpu.memory_space<vmem>>, vector<128x128xf32>,
    return
  }
  func.func @transform_0(%arg0: i32) -> (i32, i32) {
    %c0_i32 = arith.constant 0 : i32
    %c0_i32_0 = arith.constant 0 : i32
    return %arg0, %c0_i32 : i32, i32
  }
  func.func @transform_1(%arg0: i32) -> (i32, i32) {
    %c0_i32 = arith.constant 0 : i32
    %c0_i32_0 = arith.constant 0 : i32
    %c0_i32_1 = arith.constant 0 : i32
    return %c0_i32, %c0_i32_0 : i32, i32
  }
  func.func @transform_2(%arg0: i32) -> (i32, i32) {
    %c0_i32 = arith.constant 0 : i32
    %c0_i32_0 = arith.constant 0 : i32
    %c0_i32_1 = arith.constant 0 : i32
    return %c0_i32, %c0_i32_0 : i32, i32
  }
  func.func @transform_3(%arg0: i32) -> (i32, i32) {
    %c0_i32 = arith.constant 0 : i32
    %c0_i32_0 = arith.constant 0 : i32
    %c0_i32_1 = arith.constant 0 : i32
    return %c0_i32, %c0_i32_0 : i32, i32
  }
  func.func @transform_4(%arg0: i32) -> (i32, i32) {
    %c0_i32 = arith.constant 0 : i32
    %c0_i32_0 = arith.constant 0 : i32
    %c0_i32_1 = arith.constant 0 : i32
    return %c0_i32, %c0_i32_0 : i32, i32
  }
  func.func @transform_5(%arg0: i32) -> (i32, i32) {
    %c0_i32 = arith.constant 0 : i32
    %c0_i32_0 = arith.constant 0 : i32
    %c0_i32_1 = arith.constant 0 : i32
    return %c0_i32, %c0_i32_0 : i32, i32
  }
  func.func @transform_6(%arg0: i32) -> (i32, i32) {
    %c0_i32 = arith.constant 0 : i32
    %c0_i32_0 = arith.constant 0 : i32
    %c0_i32_1 = arith.constant 0 : i32
    return %c0_i32, %c0_i32_0 : i32, i32
  }
  func.func @transform_7(%arg0: i32) -> (i32, i32) {
    %c0_i32 = arith.constant 0 : i32
    %c0_i32_0 = arith.constant 0 : i32
    %c0_i32_1 = arith.constant 0 : i32
    return %c0_i32, %c0_i32_0 : i32, i32
  }
  func.func @transform_8(%arg0: i32) -> (i32, i32) {
    %c0_i32 = arith.constant 0 : i32
    %c0_i32_0 = arith.constant 0 : i32
    %c0_i32_1 = arith.constant 0 : i32
    return %c0_i32, %c0_i32_0 : i32, i32
  }
  func.func @transform_9(%arg0: i32) -> (i32, i32) {
    %c0_i32 = arith.constant 0 : i32
    %c0_i32_0 = arith.constant 0 : i32
    return %arg0, %c0_i32 : i32, i32
  }
  func.func @transform_10(%arg0: i32) -> (i32, i32) {
    %c0_i32 = arith.constant 0 : i32
    %c0_i32_0 = arith.constant 0 : i32
    return %arg0, %c0_i32 : i32, i32
  }
}

</mosaic_0001>

<bundles_post_ra>
// kernel: gan_forward.1
= control target key start
LH: loop header
LB: loop body
LE: loop exit
PB: predicated region body
PF: predicated region fallthrough
CT: control target
= control target key end

     0   :  { %s1502_s15 = smov 0   ;;  %s1725_s0 = inlined_call_operand.vmem [shape: f32[256,8], index: 0, kind: input, shape index: {}]   ;;  %s1726_s1 = inlined_call_operand.vmem [shape: bf16[8,32], index: 1, kind: input, shape index: {}]   ;;  %s1727_s2 = inlined_call_operand.vmem [shape: f32[1,32], index: 2, kind: input, shape index: {}]   ;;  %s1728_s3 = inlined_call_operand.vmem [shape: bf16[32,64], index: 3, kind: input, shape index: {}]   ;;  %s1729_s4 = inlined_call_operand.vmem [shape: f32[1,64], index: 4, kind: input, shape index: {}]   ;;  %s1730_s5 = inlined_call_operand.vmem [shape: bf16[64,32], index: 5, kind: input, shape index: {}]   ;;  %s1731_s6 = inlined_call_operand.vmem [shape: f32[1,32], index: 6, kind: input, shape index: {}]   ;;  %s1732_s7 = inlined_call_operand.vmem [shape: f32[1,32], index: 7, kind: input, shape index: {}]   ;;  %s1733_s8 = inlined_call_operand.<no memory space> [shape: f32[1,1], index: 8, kind: input, shape index: {}]   ;;  %s1734_s9 = inlined_call_operand.vmem [shape: f32[256,64], index: 9, kind: output, shape index: {0}]   ;;  %s1735_s10 = inlined_call_operand.vmem [shape: f32[256,128], index: 10, kind: output, shape index: {1}]  }
   0x1   :  { %16 = sst [smem:[#allocation2]] %s1733_s8 }
   0x2 LB: > { %s1214_s16 = sadd.s32 4294967295, %s1442_s15   ;;  %p1218_p0 = scmp.ge.s32.totalorder %s1442_s15, 1  ;;  %s1442_s15 = sphi %s1502_s15, %s22_s15  }
   0x3   : > { %p317_p1 = scmp.lt.s32.totalorder %s1442_s15, 3 }
   0x5   : > { %p318_p2 = pnand %p1218_p0, %p317_p1 }
   0x6   : > { %v403_v0 = vld [vmem:[%s1726_s1] sm:$0xf] (!%p318_p2)  ;;  %vm436_vm0 = vcmask (!%p318_p2), 1043456   ;;  %s1219_s8 = sshll.u32 (!%p318_p2), %s1214_s16, 4  ;;  %vm411_vm1 = vcmask (!%p318_p2), 64512   ;;  %v1367_v27 = vld [vmem:[%s1728_s3 + $0x8] sm:$0xff] (!%p318_p2)  }
   0x7   : > { %321 = sbr.rel (%p318_p2) target bundleno = 887 (0x377), region = 56  ;;  %v1366_v1 = vld [vmem:[%s1728_s3] sm:$0xff] (!%p318_p2)   ;;  %1356 = vmatprep.subr.msk.bf16.mxu0 (!%p318_p2), %vm436_vm0, %v403_v0  ;;  %v438_v2 = vsel (!%p318_p2), %vm436_vm0, %v403_v0, 0  ;;  %p361_p3 = scmp.lt.s32.totalorder (!%p318_p2), %s1219_s8, 31  ;;  %1357 = vmatprep.subr.msk.bf16.mxu1 (!%p318_p2), %vm436_vm0, %v403_v0  ;;  %vm584_vm2 = vcmask (!%p318_p2), 261120   ;;  %vm722_vm3 = vcmask (!%p318_p2), 523264  }
   0x8   : > { %1293 = vmatpush3.bf16.msra.mxu0 (!%p318_p2), %v438_v2  ;;  %1355 = vmatpush3.bf16.msra.mxu1 (!%p318_p2), %v438_v2  ;;  %v1225_v28 = vld [vmem:[%s1727_s2] ss:$0 sm:$0xff] (!%p318_p2)  ;;  %s1026_s27 = sld [smem:[#allocation2]] (!%p318_p2) }
   0x9   : > { %1310 = vmatprep.subr.bf16.mxu1 (!%p318_p2), %v1366_v1 }
   0xe   : > { %s1737_s8 = smov (!%p361_p3, %s1219_s8), 31 }
   0xf   : > { %s1516_s21 = sshll.u32 %s1737_s8, 3 }
  0x10   : > { %s364_s24 = scalar_lea.vmem %s1725_s0, %s1516_s21  ;;  %s1571_s22 = scalar_lea.vmem %s1734_s9, %s1516_s21 }
  0x11   : > { %v379_v3 = vld [vmem:[%s364_s24] sm:$0xff]  ;;  %v380_v4 = vld [vmem:[%s364_s24 + $0x8] sm:$0xff]  ;;  %v381_v5 = vld [vmem:[%s364_s24 + $0x10] sm:$0xff]  ;;  %s1696_s30 = scalar_lea.vmem %s1735_s10, %s1516_s21 }
  0x12   : > { %v395_v6 = vpack.c.bf16 %v380_v4, %v379_v3  ;;  %v382_v7 = vld [vmem:[%s364_s24 + $0x18] sm:$0xff]  ;;  %v383_v8 = vld [vmem:[%s364_s24 + $0x20] sm:$0xff]  ;;  %v384_v9 = vld [vmem:[%s364_s24 + $0x28] sm:$0xff] }
  0x13   : > { %v396_v10 = vpack.c.bf16 %v382_v7, %v381_v5  ;;  %v397_v11 = vpack.c.bf16 %v384_v9, %v383_v8  ;;  %v387_v12 = vld [vmem:[%s364_s24 + $0x40] sm:$0xff]  ;;  %v388_v13 = vld [vmem:[%s364_s24 + $0x48] sm:$0xff]  ;;  %v389_v14 = vld [vmem:[%s364_s24 + $0x50] sm:$0xff] }
  0x14   : > { %1294 = vmatprep.mubr.msk.bf16.mxu0 %vm411_vm1, %v395_v6  ;;  %v390_v15 = vld [vmem:[%s364_s24 + $0x58] sm:$0xff]  ;;  %v399_v16 = vpack.c.bf16 %v388_v13, %v387_v12  ;;  %v391_v18 = vld [vmem:[%s364_s24 + $0x60] sm:$0xff]  ;;  %v392_v19 = vld [vmem:[%s364_s24 + $0x68] sm:$0xff] }
  0x15   : > { %1295 = vmatmul.mubr.msk.bf16.vlgmr.msra.gmra.mrb[0].mxu0 %vm411_vm1, %v396_v10  ;;  %v400_v17 = vpack.c.bf16 %v390_v15, %v389_v14  ;;  %v385_v20 = vld [vmem:[%s364_s24 + $0x30] sm:$0xff]  ;;  %v386_v21 = vld [vmem:[%s364_s24 + $0x38] sm:$0xff]  ;;  %v401_v22 = vpack.c.bf16 %v392_v19, %v391_v18 }
  0x16   : > { %1298 = vmatprep.mubr.msk.bf16.mxu0 %vm411_vm1, %v397_v11  ;;  %1302 = vmatprep.mubr.msk.bf16.mxu1 %vm411_vm1, %v399_v16  ;;  %v398_v23 = vpack.c.bf16 %v386_v21, %v385_v20  ;;  %v393_v24 = vld [vmem:[%s364_s24 + $0x70] sm:$0xff]  ;;  %v394_v25 = vld [vmem:[%s364_s24 + $0x78] sm:$0xff]  ;;  %v1368_v21 = vld [vmem:[%s1730_s5] sm:$0xff]  }
  0x17   : > { %1303 = vmatmul.mubr.msk.bf16.vlgmr.msra.gmra.mrb[0].mxu1 %vm411_vm1, %v400_v17  ;;  %v402_v26 = vpack.c.bf16 %v394_v25, %v393_v24  ;;  %1330 = vmatprep.subr.bf16.mxu0 %v1368_v21  ;;  %v1371_v24 = vld [vmem:[%s1730_s5 + $0x18] sm:$0xff]   ;;  %v1559_v25 = vld [vmem:[%s1729_s4] ss:$0 sm:$0xff] }
  0x18   : > { %1306 = vmatprep.mubr.msk.bf16.mxu1 %vm411_vm1, %v401_v22  ;;  %1311 = vmatpush3.bf16.msra.mxu1 %v1366_v1  ;;  %v1369_v22 = vld [vmem:[%s1730_s5 + $0x8] sm:$0xff]  }
  0x19   : > { %1312 = vmatprep.subr.bf16.mxu1 %v1367_v27  ;;  %1331 = vmatpush3.bf16.msra.mxu0 %v1368_v21 }
  0x1a   : > { %1332 = vmatprep.subr.bf16.mxu0 %v1369_v22 }
  0x1c   : > { %1313 = vmatpush3.bf16.msra.mxu1 %v1367_v27 }
  0x1d   : > { %1299 = vmatmul.mubr.msk.bf16.gmra.mrb[4].mxu0 %vm411_vm1, %v398_v23  ;;  %v1370_v23 = vld [vmem:[%s1730_s5 + $0x10] sm:$0xff]  }
  0x1e   : > { %1333 = vmatpush3.bf16.msra.mxu0 %v1369_v22 }
  0x1f   : > { %1307 = vmatmul.mubr.msk.bf16.gmra.mrb[4].mxu1 %vm411_vm1, %v402_v26  ;;  %1334 = vmatprep.subr.bf16.mxu0 %v1370_v23 }
  0x22   : > { %1335 = vmatpush3.bf16.msra.mxu0 %v1370_v23 }
  0x23   : > { %1336 = vmatprep.subr.bf16.mxu0 %v1371_v24 }
  0x26   : > { %1337 = vmatpush3.bf16.msra.mxu0 %v1371_v24 }
  0xe8   : > { %v1296_v29 = vpop.f32.mrb[0].mxu0 }
  0xe9   : > { %v483_v30 = vadd.f32 %v1296_v29, %v1225_v28  ;;  %v474_v31 = vpop.f32.mrb[1].mxu0 }
  0xea   : > { %v475_v32 = vadd.f32 %v1225_v28, %v474_v31  ;;  %v1297_v33 = vpop.f32.mrb[2].mxu0  ;;  %v1304_v36 = vpop.f32.mrb[0].mxu1 }
  0xeb   : > { %v486_v34 = vadd.f32 %v1297_v33, %v1225_v28  ;;  %v477_v35 = vpop.f32.mrb[3].mxu0  ;;  %v515_v38 = vadd.f32 %v1304_v36, %v1225_v28  ;;  %v506_v39 = vpop.f32.mrb[1].mxu1  ;;  %v539_v40 = vmax.f32 %v483_v30, 0.0 }
  0xec   : > { %v478_v37 = vadd.f32 %v1225_v28, %v477_v35  ;;  %v507_v42 = vadd.f32 %v1225_v28, %v506_v39  ;;  %v1305_v43 = vpop.f32.mrb[2].mxu1  ;;  %v537_v44 = vmax.f32 %v475_v32, 0.0 }
  0xed   : > { %v540_v41 = vmax.f32 %v486_v34, 0.0  ;;  %v547_v46 = vmax.f32 %v515_v38, 0.0  ;;  %v518_v47 = vadd.f32 %v1305_v43, %v1225_v28  ;;  %v509_v48 = vpop.f32.mrb[3].mxu1 }
  0xee   : > { %v538_v45 = vmax.f32 %v478_v37, 0.0  ;;  %v545_v50 = vmax.f32 %v507_v42, 0.0  ;;  %v510_v51 = vadd.f32 %v1225_v28, %v509_v48 }
  0xef   : > { %v554_v49 = vpack.c.bf16 %v540_v41, %v539_v40  ;;  %v548_v54 = vmax.f32 %v518_v47, 0.0 }
  0xf0   : > { %v553_v52 = vpack.c.bf16 %v538_v45, %v537_v44  ;;  %v1300_v53 = vpop.f32.mrb[4].mxu0  ;;  %v546_v57 = vmax.f32 %v510_v51, 0.0 }
  0xf1   : > { %v499_v55 = vadd.f32 %v1300_v53, %v1225_v28  ;;  %v490_v56 = vpop.f32.mrb[5].mxu0  ;;  %v558_v60 = vpack.c.bf16 %v548_v54, %v547_v46 }
  0xf2   : > { %v491_v58 = vadd.f32 %v1225_v28, %v490_v56  ;;  %v1301_v59 = vpop.f32.mrb[6].mxu0  ;;  %1314 = vmatprep.mubr.msk.bf16.mxu1 %vm584_vm2, %v553_v52  ;;  %v557_v63 = vpack.c.bf16 %v546_v57, %v545_v50  ;;  %v1308_v0 = vpop.f32.mrb[4].mxu1 }
  0xf3   : > { %v502_v61 = vadd.f32 %v1301_v59, %v1225_v28  ;;  %v493_v62 = vpop.f32.mrb[7].mxu0  ;;  %1315 = vmatmul.mubr.msk.bf16.vlgmr.msra.gmra.mrb[8].mxu1 %vm584_vm2, %v554_v49  ;;  %v531_v2 = vadd.f32 %v1308_v0, %v1225_v28  ;;  %v522_v3 = vpop.f32.mrb[5].mxu1  ;;  %v543_v4 = vmax.f32 %v499_v55, 0.0 }
  0xf4   : > { %v494_v1 = vadd.f32 %v1225_v28, %v493_v62  ;;  %v523_v6 = vadd.f32 %v1225_v28, %v522_v3  ;;  %v1309_v7 = vpop.f32.mrb[6].mxu1  ;;  %v541_v8 = vmax.f32 %v491_v58, 0.0 }
  0xf5   : > { %v544_v5 = vmax.f32 %v502_v61, 0.0  ;;  %v551_v10 = vmax.f32 %v531_v2, 0.0  ;;  %v534_v11 = vadd.f32 %v1309_v7, %v1225_v28  ;;  %v525_v12 = vpop.f32.mrb[7].mxu1 }
  0xf6   : > { %v542_v9 = vmax.f32 %v494_v1, 0.0  ;;  %v549_v14 = vmax.f32 %v523_v6, 0.0  ;;  %v526_v15 = vadd.f32 %v1225_v28, %v525_v12 }
  0xf7   : > { %v556_v13 = vpack.c.bf16 %v544_v5, %v543_v4  ;;  %v552_v17 = vmax.f32 %v534_v11, 0.0 }
  0xf8   : > { %v555_v16 = vpack.c.bf16 %v542_v9, %v541_v8  ;;  %v550_v18 = vmax.f32 %v526_v15, 0.0 }
  0xf9   : > { %v560_v19 = vpack.c.bf16 %v552_v17, %v551_v10 }
  0xfa   : > { %1318 = vmatprep.mubr.msk.bf16.mxu1 %vm584_vm2, %v555_v16  ;;  %v559_v20 = vpack.c.bf16 %v550_v18, %v549_v14  ;;  %v1626_v18 = vld [vmem:[%s1731_s6] ss:$0 sm:$0xff] }
  0xfb   : > { %1319 = vmatmul.mubr.msk.bf16.gmra.mrb[12].mxu1 %vm584_vm2, %v556_v13 }
  0xfc   : > { %1322 = vmatprep.mubr.msk.bf16.mxu1 %vm584_vm2, %v557_v63 }
 0x103   : > { %1323 = vmatmul.mubr.msk.bf16.gmra.mrb[16].mxu1 %vm584_vm2, %v558_v60 }
 0x104   : > { %1326 = vmatprep.mubr.msk.bf16.mxu1 %vm584_vm2, %v559_v20 }
 0x10b   : > { %1327 = vmatmul.mubr.msk.bf16.gmra.mrb[20].mxu1 %vm584_vm2, %v560_v19 }
 0x1c6   : > { %v1316_v26 = vpop.f32.mrb[8].mxu1 }
 0x1c7   : > { %v652_v27 = vadd.f32 %v1316_v26, %v1559_v25  ;;  %v643_v28 = vpop.f32.mrb[9].mxu1 }
 0x1c8   : > { %v644_v29 = vadd.f32 %v1559_v25, %v643_v28  ;;  %v1317_v30 = vpop.f32.mrb[10].mxu1 }
 0x1c9   : > { %1372 = vtanh.f32 %v652_v27  ;;  %v655_v31 = vadd.f32 %v1317_v30, %v1559_v25  ;;  %v646_v32 = vpop.f32.mrb[11].mxu1  ;;  %v1634_v27 = vld [vmem:[%s1732_s7] ss:$0 sm:$0xff] }
 0x1ca   : > { %1374 = vtanh.f32 %v644_v29  ;;  %v647_v33 = vadd.f32 %v1559_v25, %v646_v32 }
 0x1cb   : > { %1376 = vtanh.f32 %v655_v31 }
 0x1cc   : > { %1378 = vtanh.f32 %v647_v33 }
 0x1ce   : > { %v1320_v34 = vpop.f32.mrb[12].mxu1 }
 0x1cf   : > { %v668_v35 = vadd.f32 %v1320_v34, %v1559_v25  ;;  %v659_v36 = vpop.f32.mrb[13].mxu1 }
 0x1d0   : > { %v660_v37 = vadd.f32 %v1559_v25, %v659_v36  ;;  %v1321_v38 = vpop.f32.mrb[14].mxu1 }
 0x1d1   : > { %1380 = vtanh.f32 %v668_v35  ;;  %v671_v39 = vadd.f32 %v1321_v38, %v1559_v25  ;;  %v662_v40 = vpop.f32.mrb[15].mxu1 }
 0x1d2   : > { %1382 = vtanh.f32 %v660_v37  ;;  %v663_v41 = vadd.f32 %v1559_v25, %v662_v40 }
 0x1d3   : > { %v1373_v42 = vpop.eup %1372  ;;  %1384 = vtanh.f32 %v671_v39 }
 0x1d4   : > { %v1375_v43 = vpop.eup %1374  ;;  %725 = vst.msk [vmem:[%s1571_s22 + $0x10] sm:$0xff] %vm722_vm3, %v1373_v42  ;;  %1386 = vtanh.f32 %v663_v41 }
 0x1d5   : > { %v1377_v44 = vpop.eup %1376  ;;  %723 = vst.msk [vmem:[%s1571_s22] sm:$0xff] %vm722_vm3, %v1375_v43 }
 0x1d6   : > { %v1379_v45 = vpop.eup %1378  ;;  %726 = vst.msk [vmem:[%s1571_s22 + $0x18] sm:$0xff] %vm722_vm3, %v1377_v44  ;;  %v740_v46 = vpack.c.bf16 %v1377_v44, %v1373_v42  ;;  %v1324_v47 = vpop.f32.mrb[16].mxu1 }
 0x1d7   : > { %724 = vst.msk [vmem:[%s1571_s22 + $0x8] sm:$0xff] %vm722_vm3, %v1379_v45  ;;  %v684_v48 = vadd.f32 %v1324_v47, %v1559_v25  ;;  %v675_v49 = vpop.f32.mrb[17].mxu1  ;;  %v739_v50 = vpack.c.bf16 %v1379_v45, %v1375_v43 }
 0x1d8   : > { %v676_v51 = vadd.f32 %v1559_v25, %v675_v49  ;;  %v1325_v52 = vpop.f32.mrb[18].mxu1 }
 0x1d9   : > { %1388 = vtanh.f32 %v684_v48  ;;  %v687_v53 = vadd.f32 %v1325_v52, %v1559_v25  ;;  %v678_v54 = vpop.f32.mrb[19].mxu1  ;;  %1338 = vmatprep.mubr.msk.bf16.mxu0 %vm722_vm3, %v739_v50 }
 0x1da   : > { %1390 = vtanh.f32 %v676_v51  ;;  %v679_v55 = vadd.f32 %v1559_v25, %v678_v54  ;;  %1339 = vmatmul.mubr.msk.bf16.vlgmr.msra.gmra.mrb[8].mxu0 %vm722_vm3, %v740_v46 }
 0x1db   : > { %v1381_v56 = vpop.eup %1380  ;;  %1392 = vtanh.f32 %v687_v53 }
 0x1dc   : > { %v1383_v57 = vpop.eup %1382  ;;  %729 = vst.msk [vmem:[%s1571_s22 + $0x30] sm:$0xff] %vm722_vm3, %v1381_v56  ;;  %1394 = vtanh.f32 %v679_v55 }
 0x1dd   : > { %v1385_v58 = vpop.eup %1384  ;;  %727 = vst.msk [vmem:[%s1571_s22 + $0x20] sm:$0xff] %vm722_vm3, %v1383_v57 }
 0x1de   : > { %v1387_v59 = vpop.eup %1386  ;;  %730 = vst.msk [vmem:[%s1571_s22 + $0x38] sm:$0xff] %vm722_vm3, %v1385_v58  ;;  %v1328_v60 = vpop.f32.mrb[20].mxu1  ;;  %v742_v61 = vpack.c.bf16 %v1385_v58, %v1381_v56 }
 0x1df   : > { %728 = vst.msk [vmem:[%s1571_s22 + $0x28] sm:$0xff] %vm722_vm3, %v1387_v59  ;;  %v700_v62 = vadd.f32 %v1328_v60, %v1559_v25  ;;  %v691_v63 = vpop.f32.mrb[21].mxu1  ;;  %v741_v0 = vpack.c.bf16 %v1387_v59, %v1383_v57 }
 0x1e0   : > { %v692_v1 = vadd.f32 %v1559_v25, %v691_v63  ;;  %v1329_v2 = vpop.f32.mrb[22].mxu1 }
 0x1e1   : > { %1396 = vtanh.f32 %v700_v62  ;;  %v703_v3 = vadd.f32 %v1329_v2, %v1559_v25  ;;  %v694_v4 = vpop.f32.mrb[23].mxu1  ;;  %1342 = vmatprep.mubr.msk.bf16.mxu0 %vm722_vm3, %v741_v0 }
 0x1e2   : > { %1398 = vtanh.f32 %v692_v1  ;;  %v695_v5 = vadd.f32 %v1559_v25, %v694_v4  ;;  %1343 = vmatmul.mubr.msk.bf16.gmra.mrb[12].mxu0 %vm722_vm3, %v742_v61 }
 0x1e3   : > { %v1389_v6 = vpop.eup %1388  ;;  %1400 = vtanh.f32 %v703_v3 }
 0x1e4   : > { %v1391_v7 = vpop.eup %1390  ;;  %733 = vst.msk [vmem:[%s1571_s22 + $0x50] sm:$0xff] %vm722_vm3, %v1389_v6  ;;  %1402 = vtanh.f32 %v695_v5 }
 0x1e5   : > { %v1393_v8 = vpop.eup %1392  ;;  %731 = vst.msk [vmem:[%s1571_s22 + $0x40] sm:$0xff] %vm722_vm3, %v1391_v7 }
 0x1e6   : > { %v1395_v9 = vpop.eup %1394  ;;  %734 = vst.msk [vmem:[%s1571_s22 + $0x58] sm:$0xff] %vm722_vm3, %v1393_v8  ;;  %v744_v10 = vpack.c.bf16 %v1393_v8, %v1389_v6 }
 0x1e7   : > { %732 = vst.msk [vmem:[%s1571_s22 + $0x48] sm:$0xff] %vm722_vm3, %v1395_v9  ;;  %v743_v11 = vpack.c.bf16 %v1395_v9, %v1391_v7 }
 0x1e9   : > { %1346 = vmatprep.mubr.msk.bf16.mxu0 %vm722_vm3, %v743_v11 }
 0x1ea   : > { %1347 = vmatmul.mubr.msk.bf16.gmra.mrb[16].mxu0 %vm722_vm3, %v744_v10 }
 0x1eb   : > { %v1397_v12 = vpop.eup %1396 }
 0x1ec   : > { %v1399_v13 = vpop.eup %1398  ;;  %737 = vst.msk [vmem:[%s1571_s22 + $0x70] sm:$0xff] %vm722_vm3, %v1397_v12 }
 0x1ed   : > { %v1401_v14 = vpop.eup %1400  ;;  %735 = vst.msk [vmem:[%s1571_s22 + $0x60] sm:$0xff] %vm722_vm3, %v1399_v13 }
 0x1ee   : > { %v1403_v15 = vpop.eup %1402  ;;  %738 = vst.msk [vmem:[%s1571_s22 + $0x78] sm:$0xff] %vm722_vm3, %v1401_v14  ;;  %v746_v16 = vpack.c.bf16 %v1401_v14, %v1397_v12 }
 0x1ef   : > { %736 = vst.msk [vmem:[%s1571_s22 + $0x68] sm:$0xff] %vm722_vm3, %v1403_v15  ;;  %v745_v17 = vpack.c.bf16 %v1403_v15, %v1399_v13 }
 0x1f1   : > { %1350 = vmatprep.mubr.msk.bf16.mxu0 %vm722_vm3, %v745_v17 }
 0x1f2   : > { %1351 = vmatmul.mubr.msk.bf16.gmra.mrb[20].mxu0 %vm722_vm3, %v746_v16 }
 0x2ad   : > { %v1340_v19 = vpop.f32.mrb[8].mxu0 }
 0x2ae   : > { %v853_v20 = vadd.f32 %v1340_v19, %v1626_v18  ;;  %v844_v21 = vpop.f32.mrb[9].mxu0 }
 0x2af   : > { %v845_v22 = vadd.f32 %v1626_v18, %v844_v21  ;;  %v1341_v23 = vpop.f32.mrb[10].mxu0 }
 0x2b0   : > { %v925_v24 = vmul.f32 0.2, %v853_v20  ;;  %v856_v25 = vadd.f32 %v1341_v23, %v1626_v18  ;;  %v847_v26 = vpop.f32.mrb[11].mxu0  ;;  %vm909_vm4 = vcmp.gt.f32.partialorder %v853_v20, 0.0 }
 0x2b1   : > { %v923_v28 = vmul.f32 0.2, %v845_v22  ;;  %v848_v29 = vadd.f32 %v1626_v18, %v847_v26  ;;  %vm907_vm5 = vcmp.gt.f32.partialorder %v845_v22, 0.0 }
 0x2b2   : > { %vm910_vm6 = vcmp.gt.f32.partialorder %v856_v25, 0.0  ;;  %v926_v30 = vmul.f32 0.2, %v856_v25  ;;  %v941_v31 = vsel %vm909_vm4, %v853_v20, %v925_v24 }
 0x2b3   : > { %vm908_vm7 = vcmp.gt.f32.partialorder %v848_v29, 0.0  ;;  %v924_v32 = vmul.f32 0.2, %v848_v29  ;;  %v964_v33 = vmul.f32 %v1634_v27, %v941_v31  ;;  %v939_v34 = vsel %vm907_vm5, %v845_v22, %v923_v28 }
 0x2b4   : > { %v962_v35 = vmul.f32 %v1634_v27, %v939_v34  ;;  %v942_v36 = vsel %vm910_vm6, %v856_v25, %v926_v30 }
 0x2b5   : > { %v1344_v37 = vpop.f32.mrb[12].mxu0  ;;  %v984_v38 = vsel %vm584_vm2, %v964_v33, 0.0  ;;  %v965_v39 = vmul.f32 %v1634_v27, %v942_v36  ;;  %v940_v40 = vsel %vm908_vm7, %v848_v29, %v924_v32 }
 0x2b6   : > { %v869_v41 = vadd.f32 %v1344_v37, %v1626_v18  ;;  %985 = vadd.xlane.f32.xlu1 %v984_v38  ;;  %v860_v42 = vpop.f32.mrb[13].mxu0  ;;  %v978_v43 = vsel %vm584_vm2, %v962_v35, 0.0  ;;  %v963_v44 = vmul.f32 %v1634_v27, %v940_v40 }
 0x2b7   : > { %v861_v45 = vadd.f32 %v1626_v18, %v860_v42  ;;  %v1345_v46 = vpop.f32.mrb[14].mxu0  ;;  %979 = vadd.xlane.f32.xlu0 %v978_v43  ;;  %v987_v52 = vsel %vm584_vm2, %v965_v39, 0.0 }
 0x2b8   : > { %vm913_vm8 = vcmp.gt.f32.partialorder %v869_v41, 0.0  ;;  %v929_v47 = vmul.f32 0.2, %v869_v41  ;;  %v872_v48 = vadd.f32 %v1345_v46, %v1626_v18  ;;  %v863_v49 = vpop.f32.mrb[15].mxu0  ;;  %v981_v54 = vsel %vm584_vm2, %v963_v44, 0.0 }
 0x2b9   : > { %vm911_vm9 = vcmp.gt.f32.partialorder %v861_v45, 0.0  ;;  %v927_v50 = vmul.f32 0.2, %v861_v45  ;;  %v864_v51 = vadd.f32 %v1626_v18, %v863_v49 }
 0x2ba   : > { %vm914_vm10 = vcmp.gt.f32.partialorder %v872_v48, 0.0  ;;  %v930_v53 = vmul.f32 0.2, %v872_v48  ;;  %988 = vadd.xlane.f32.xlu1 %v987_v52  ;;  %v945_v55 = vsel %vm913_vm8, %v869_v41, %v929_v47 }
 0x2bb   : > { %vm912_vm11 = vcmp.gt.f32.partialorder %v864_v51, 0.0  ;;  %v928_v56 = vmul.f32 0.2, %v864_v51  ;;  %982 = vadd.xlane.f32.xlu0 %v981_v54  ;;  %v968_v57 = vmul.f32 %v1634_v27, %v945_v55  ;;  %v943_v58 = vsel %vm911_vm9, %v861_v45, %v927_v50 }
 0x2bc   : > { %v946_v59 = vsel %vm914_vm10, %v872_v48, %v930_v53  ;;  %v966_v63 = vmul.f32 %v1634_v27, %v943_v58  ;;  %v1682_v53 = vstv %s1026_s27 }
 0x2bd   : > { %v1348_v60 = vpop.f32.mrb[16].mxu0  ;;  %v996_v61 = vsel %vm584_vm2, %v968_v57, 0.0  ;;  %v969_v62 = vmul.f32 %v1634_v27, %v946_v59  ;;  %v944_v0 = vsel %vm912_vm11, %v864_v51, %v928_v56 }
 0x2be   : > { %v885_v1 = vadd.f32 %v1348_v60, %v1626_v18  ;;  %v876_v2 = vpop.f32.mrb[17].mxu0  ;;  %v967_v3 = vmul.f32 %v1634_v27, %v944_v0  ;;  %v990_v12 = vsel %vm584_vm2, %v966_v63, 0.0 }
 0x2bf   : > { %v877_v4 = vadd.f32 %v1626_v18, %v876_v2  ;;  %v1349_v5 = vpop.f32.mrb[18].mxu0  ;;  %997 = vadd.xlane.f32.xlu0 %v996_v61  ;;  %v999_v6 = vsel %vm584_vm2, %v969_v62, 0.0 }
 0x2c0   : > { %vm917_vm12 = vcmp.gt.f32.partialorder %v885_v1, 0.0  ;;  %v933_v7 = vmul.f32 0.2, %v885_v1  ;;  %v888_v8 = vadd.f32 %v1349_v5, %v1626_v18  ;;  %1000 = vadd.xlane.f32.xlu1 %v999_v6  ;;  %v879_v9 = vpop.f32.mrb[19].mxu0  ;;  %v993_v14 = vsel %vm584_vm2, %v967_v3, 0.0 }
 0x2c1   : > { %vm915_vm13 = vcmp.gt.f32.partialorder %v877_v4, 0.0  ;;  %v931_v10 = vmul.f32 0.2, %v877_v4  ;;  %v880_v11 = vadd.f32 %v1626_v18, %v879_v9 }
 0x2c2   : > { %vm918_vm14 = vcmp.gt.f32.partialorder %v888_v8, 0.0  ;;  %v934_v13 = vmul.f32 0.2, %v888_v8  ;;  %v949_v15 = vsel %vm917_vm12, %v885_v1, %v933_v7 }
 0x2c3   : > { %vm916_vm15 = vcmp.gt.f32.partialorder %v880_v11, 0.0  ;;  %v932_v16 = vmul.f32 0.2, %v880_v11  ;;  %991 = vadd.xlane.f32.xlu0 %v990_v12  ;;  %v972_v17 = vmul.f32 %v1634_v27, %v949_v15  ;;  %v947_v19 = vsel %vm915_vm13, %v877_v4, %v931_v10 }
 0x2c4   : > { %994 = vadd.xlane.f32.xlu1 %v993_v14  ;;  %v950_v20 = vsel %vm918_vm14, %v888_v8, %v934_v13  ;;  %v970_v28 = vmul.f32 %v1634_v27, %v947_v19 }
 0x2c5   : > { %v1352_v21 = vpop.f32.mrb[20].mxu0  ;;  %v1008_v22 = vsel %vm584_vm2, %v972_v17, 0.0  ;;  %v973_v23 = vmul.f32 %v1634_v27, %v950_v20  ;;  %v948_v24 = vsel %vm916_vm15, %v880_v11, %v932_v16 }
 0x2c6   : > { %v901_v25 = vadd.f32 %v1352_v21, %v1626_v18  ;;  %v892_v26 = vpop.f32.mrb[21].mxu0  ;;  %v971_v29 = vmul.f32 %v1634_v27, %v948_v24  ;;  %v1002_v39 = vsel %vm584_vm2, %v970_v28, 0.0 }
 0x2c7   : > { %v893_v30 = vadd.f32 %v1626_v18, %v892_v26  ;;  %v1353_v31 = vpop.f32.mrb[22].mxu0  ;;  %1009 = vadd.xlane.f32.xlu0 %v1008_v22  ;;  %v1011_v32 = vsel %vm584_vm2, %v973_v23, 0.0 }
 0x2c8   : > { %vm921_vm0 = vcmp.gt.f32.partialorder %v901_v25, 0.0  ;;  %v937_v33 = vmul.f32 0.2, %v901_v25  ;;  %v904_v34 = vadd.f32 %v1353_v31, %v1626_v18  ;;  %v895_v35 = vpop.f32.mrb[23].mxu0  ;;  %1012 = vadd.xlane.f32.xlu1 %v1011_v32  ;;  %v1005_v40 = vsel %vm584_vm2, %v971_v29, 0.0 }
 0x2c9   : > { %vm919_vm1 = vcmp.gt.f32.partialorder %v893_v30, 0.0  ;;  %v935_v36 = vmul.f32 0.2, %v893_v30  ;;  %v896_v37 = vadd.f32 %v1626_v18, %v895_v35 }
 0x2ca   : > { %vm922_vm3 = vcmp.gt.f32.partialorder %v904_v34, 0.0  ;;  %v938_v38 = vmul.f32 0.2, %v904_v34  ;;  %v953_v43 = vsel %vm921_vm0, %v901_v25, %v937_v33 }
 0x2cb   : > { %vm920_vm4 = vcmp.gt.f32.partialorder %v896_v37, 0.0  ;;  %v936_v41 = vmul.f32 0.2, %v896_v37  ;;  %1003 = vadd.xlane.f32.xlu0 %v1002_v39  ;;  %v951_v42 = vsel %vm919_vm1, %v893_v30, %v935_v36  ;;  %v976_v48 = vmul.f32 %v1634_v27, %v953_v43 }
 0x2cc   : > { %1006 = vadd.xlane.f32.xlu1 %v1005_v40  ;;  %v974_v44 = vmul.f32 %v1634_v27, %v951_v42  ;;  %v954_v46 = vsel %vm922_vm3, %v904_v34, %v938_v38 }
 0x2cd   : > { %v952_v45 = vsel %vm920_vm4, %v896_v37, %v936_v41  ;;  %v977_v50 = vmul.f32 %v1634_v27, %v954_v46  ;;  %v1020_v51 = vsel %vm584_vm2, %v976_v48, 0.0 }
 0x2ce   : > { %v1014_v47 = vsel %vm584_vm2, %v974_v44, 0.0  ;;  %v975_v18 = vmul.f32 %v1634_v27, %v952_v45 }
 0x2cf   : > { %1015 = vadd.xlane.f32.xlu0 %v1014_v47  ;;  %v1023_v52 = vsel %vm584_vm2, %v977_v50, 0.0 }
 0x2d0   : > { %v1017_v49 = vsel %vm584_vm2, %v975_v18, 0.0 }
 0x2d1   : > { %1018 = vadd.xlane.f32.xlu1 %v1017_v49 }
 0x2d3   : > { %1021 = vadd.xlane.f32.xlu0 %v1020_v51 }
 0x2d5   : > { %1024 = vadd.xlane.f32.xlu1 %v1023_v52 }
 0x343   : > { %v986_v54 = vpop.xlane.xlu1 %985 }
 0x344   : > { %v1030_v55 = vadd.f32 %v1682_v53, %v986_v54  ;;  %v980_v56 = vpop.xlane.xlu0 %979 }
 0x345   : > { %v1028_v57 = vadd.f32 %v1682_v53, %v980_v56 }
 0x346   : > { %v1046_v58 = vmul.f32 0.5, %v1030_v55 }
 0x347   : > { %v1044_v59 = vmul.f32 0.5, %v1028_v57  ;;  %v989_v60 = vpop.xlane.xlu1 %988 }
 0x348   : > { %1404 = vtanh.f32 %v1046_v58  ;;  %v1031_v27 = vadd.f32 %v1682_v53, %v989_v60  ;;  %v983_v61 = vpop.xlane.xlu0 %982 }
 0x349   : > { %1406 = vtanh.f32 %v1044_v59  ;;  %v1029_v62 = vadd.f32 %v1682_v53, %v983_v61 }
 0x34a   : > { %v1047_v63 = vmul.f32 0.5, %v1031_v27 }
 0x34b   : > { %v1045_v0 = vmul.f32 0.5, %v1029_v62 }
 0x34c   : > { %1408 = vtanh.f32 %v1047_v63  ;;  %v998_v1 = vpop.xlane.xlu0 %997 }
 0x34d   : > { %1410 = vtanh.f32 %v1045_v0  ;;  %v1034_v2 = vadd.f32 %v1682_v53, %v998_v1  ;;  %v1001_v3 = vpop.xlane.xlu1 %1000 }
 0x34e   : > { %v1035_v4 = vadd.f32 %v1682_v53, %v1001_v3 }
 0x34f   : > { %v1050_v5 = vmul.f32 0.5, %v1034_v2 }
 0x350   : > { %v1051_v6 = vmul.f32 0.5, %v1035_v4  ;;  %v992_v7 = vpop.xlane.xlu0 %991 }
 0x351   : > { %1412 = vtanh.f32 %v1050_v5  ;;  %v1032_v8 = vadd.f32 %v1682_v53, %v992_v7  ;;  %v995_v9 = vpop.xlane.xlu1 %994 }
 0x352   : > { %v1405_v10 = vpop.eup %1404  ;;  %1414 = vtanh.f32 %v1051_v6  ;;  %v1033_v11 = vadd.f32 %v1682_v53, %v995_v9 }
 0x353   : > { %v1407_v12 = vpop.eup %1406  ;;  %v1078_v13 = vadd.f32 1.0, %v1405_v10  ;;  %v1048_v14 = vmul.f32 0.5, %v1032_v8 }
 0x354   : > { %v1076_v15 = vadd.f32 1.0, %v1407_v12  ;;  %v1049_v16 = vmul.f32 0.5, %v1033_v11  ;;  %v1010_v17 = vpop.xlane.xlu0 %1009 }
 0x355   : > { %v1094_v19 = vmul.f32 0.5, %v1078_v13  ;;  %1416 = vtanh.f32 %v1048_v14  ;;  %v1038_v20 = vadd.f32 %v1682_v53, %v1010_v17  ;;  %v1013_v21 = vpop.xlane.xlu1 %1012 }
 0x356   : > { %v1409_v22 = vpop.eup %1408  ;;  %v1092_v23 = vmul.f32 0.5, %v1076_v15  ;;  %1418 = vtanh.f32 %v1049_v16  ;;  %v1039_v24 = vadd.f32 %v1682_v53, %v1013_v21 }
 0x357   : > { %v1411_v25 = vpop.eup %1410  ;;  %1110 = vst [vmem:[%s1696_s30 + $0x10] sm:$0xff] %v1094_v19  ;;  %v1079_v26 = vadd.f32 1.0, %v1409_v22  ;;  %v1054_v28 = vmul.f32 0.5, %v1038_v20 }
 0x358   : > { %1108 = vst [vmem:[%s1696_s30] sm:$0xff] %v1092_v23  ;;  %v1077_v29 = vadd.f32 1.0, %v1411_v25  ;;  %v1055_v30 = vmul.f32 0.5, %v1039_v24  ;;  %v1004_v31 = vpop.xlane.xlu0 %1003 }
 0x359   : > { %v1095_v32 = vmul.f32 0.5, %v1079_v26  ;;  %1420 = vtanh.f32 %v1054_v28  ;;  %v1036_v33 = vadd.f32 %v1682_v53, %v1004_v31  ;;  %v1007_v34 = vpop.xlane.xlu1 %1006 }
 0x35a   : > { %v1093_v35 = vmul.f32 0.5, %v1077_v29  ;;  %1422 = vtanh.f32 %v1055_v30  ;;  %v1037_v36 = vadd.f32 %v1682_v53, %v1007_v34 }
 0x35b   : > { %v1413_v37 = vpop.eup %1412  ;;  %1111 = vst [vmem:[%s1696_s30 + $0x18] sm:$0xff] %v1095_v32  ;;  %v1052_v38 = vmul.f32 0.5, %v1036_v33 }
 0x35c   : > { %v1415_v39 = vpop.eup %1414  ;;  %1109 = vst [vmem:[%s1696_s30 + $0x8] sm:$0xff] %v1093_v35  ;;  %v1082_v40 = vadd.f32 1.0, %v1413_v37  ;;  %v1053_v41 = vmul.f32 0.5, %v1037_v36  ;;  %v1016_v42 = vpop.xlane.xlu0 %1015 }
 0x35d   : > { %v1083_v43 = vadd.f32 1.0, %v1415_v39  ;;  %1424 = vtanh.f32 %v1052_v38  ;;  %v1040_v44 = vadd.f32 %v1682_v53, %v1016_v42 }
 0x35e   : > { %v1098_v45 = vmul.f32 0.5, %v1082_v40  ;;  %1426 = vtanh.f32 %v1053_v41  ;;  %v1019_v46 = vpop.xlane.xlu1 %1018 }
 0x35f   : > { %v1417_v47 = vpop.eup %1416  ;;  %v1099_v18 = vmul.f32 0.5, %v1083_v43  ;;  %v1056_v48 = vmul.f32 0.5, %v1040_v44  ;;  %v1041_v49 = vadd.f32 %v1682_v53, %v1019_v46 }
 0x360   : > { %v1419_v50 = vpop.eup %1418  ;;  %1114 = vst [vmem:[%s1696_s30 + $0x30] sm:$0xff] %v1098_v45  ;;  %v1080_v51 = vadd.f32 1.0, %v1417_v47  ;;  %v1022_v52 = vpop.xlane.xlu0 %1021 }
 0x361   : > { %1115 = vst [vmem:[%s1696_s30 + $0x38] sm:$0xff] %v1099_v18  ;;  %v1081_v54 = vadd.f32 1.0, %v1419_v50  ;;  %1428 = vtanh.f32 %v1056_v48  ;;  %v1057_v55 = vmul.f32 0.5, %v1041_v49  ;;  %v1042_v56 = vadd.f32 %v1682_v53, %v1022_v52 }
 0x362   : > { %v1096_v57 = vmul.f32 0.5, %v1080_v51  ;;  %v1025_v58 = vpop.xlane.xlu1 %1024 }
 0x363   : > { %v1421_v59 = vpop.eup %1420  ;;  %v1097_v60 = vmul.f32 0.5, %v1081_v54  ;;  %1430 = vtanh.f32 %v1057_v55  ;;  %v1058_v27 = vmul.f32 0.5, %v1042_v56  ;;  %v1043_v61 = vadd.f32 %v1682_v53, %v1025_v58 }
 0x364   : > { %v1423_v62 = vpop.eup %1422  ;;  %1112 = vst [vmem:[%s1696_s30 + $0x20] sm:$0xff] %v1096_v57  ;;  %v1086_v63 = vadd.f32 1.0, %v1421_v59 }
 0x365   : > { %1113 = vst [vmem:[%s1696_s30 + $0x28] sm:$0xff] %v1097_v60  ;;  %v1087_v0 = vadd.f32 1.0, %v1423_v62  ;;  %1432 = vtanh.f32 %v1058_v27  ;;  %v1059_v1 = vmul.f32 0.5, %v1043_v61 }
 0x366   : > { %v1102_v2 = vmul.f32 0.5, %v1086_v63 }
 0x367   : > { %v1425_v3 = vpop.eup %1424  ;;  %v1103_v4 = vmul.f32 0.5, %v1087_v0  ;;  %1434 = vtanh.f32 %v1059_v1 }
 0x368   : > { %v1427_v5 = vpop.eup %1426  ;;  %1118 = vst [vmem:[%s1696_s30 + $0x50] sm:$0xff] %v1102_v2  ;;  %v1084_v6 = vadd.f32 1.0, %v1425_v3 }
 0x369   : > { %1119 = vst [vmem:[%s1696_s30 + $0x58] sm:$0xff] %v1103_v4  ;;  %v1085_v53 = vadd.f32 1.0, %v1427_v5 }
 0x36a   : > { %v1100_v7 = vmul.f32 0.5, %v1084_v6 }
 0x36b   : > { %v1429_v8 = vpop.eup %1428  ;;  %v1101_v9 = vmul.f32 0.5, %v1085_v53 }
 0x36c   : > { %1116 = vst [vmem:[%s1696_s30 + $0x40] sm:$0xff] %v1100_v7  ;;  %v1088_v10 = vadd.f32 1.0, %v1429_v8 }
 0x36d   : > { %v1431_v11 = vpop.eup %1430  ;;  %1117 = vst [vmem:[%s1696_s30 + $0x48] sm:$0xff] %v1101_v9 }
 0x36e   : > { %v1104_v12 = vmul.f32 0.5, %v1088_v10  ;;  %v1089_v13 = vadd.f32 1.0, %v1431_v11 }
 0x36f   : > { %v1433_v14 = vpop.eup %1432 }
 0x370   : > { %1120 = vst [vmem:[%s1696_s30 + $0x60] sm:$0xff] %v1104_v12  ;;  %v1105_v15 = vmul.f32 0.5, %v1089_v13  ;;  %v1090_v16 = vadd.f32 1.0, %v1433_v14 }
 0x371   : > { %v1435_v17 = vpop.eup %1434 }
 0x372   : > { %1121 = vst [vmem:[%s1696_s30 + $0x68] sm:$0xff] %v1105_v15  ;;  %v1106_v19 = vmul.f32 0.5, %v1090_v16  ;;  %v1091_v20 = vadd.f32 1.0, %v1435_v17 }
 0x374   : > { %1122 = vst [vmem:[%s1696_s30 + $0x70] sm:$0xff] %v1106_v19  ;;  %v1107_v21 = vmul.f32 0.5, %v1091_v20 }
 0x376   : > { %1123 = vst [vmem:[%s1696_s30 + $0x78] sm:$0xff] %v1107_v21 }
 0x377 PF: > { %s22_s15 = sadd.s32 1, %s1442_s15  }
 0x378   : > { %p19_p4 = scmp.ge.s32.totalorder %s22_s15, 4  }
 0x37a   :  { %21 = sbr.rel (!%p19_p4) target bundleno = 2 (0x2), region = 98 }

</bundles_post_ra>
